<compile_context>
chip_gen: v6e
topology: v6e:2x2x1
jax: 0.10.0
libtpu: 0.0.40
codegen_flags: <defaults>
</compile_context>

<pallas_src>
import functools

import jax
import jax.numpy as jnp
from jax.experimental import pallas as pl
from jax.experimental.pallas import tpu as pltpu


def _focal_loss_kernel(logits_ref, target_ref, out_ref, acc_ref, *, gamma, n_valid, tile_n):
    i = pl.program_id(0)

    @pl.when(i == 0)
    def _init():
        acc_ref[...] = jnp.zeros_like(acc_ref)

    # Upcast inside the kernel: inputs can stay bf16 in HBM (half the DMA bytes).
    x = logits_ref[...].astype(jnp.float32)                       # (tile_n, C)
    t = target_ref[...]                                           # (tile_n, 1) int32

    # Numerically stable log-sum-exp along the lane (class) axis, in f32.
    m = jnp.max(x, axis=-1, keepdims=True)                        # (tile_n, 1)
    z = x - m                                                     # (tile_n, C)
    lse = jnp.log(jnp.sum(jnp.exp(z), axis=-1, keepdims=True))    # (tile_n, 1)

    # Gather the target logit directly — no full (tile_n, C) logprob / onehot tensors.
    col = jax.lax.broadcasted_iota(jnp.int32, z.shape, 1)         # (tile_n, C)
    z_t = jnp.sum(jnp.where(col == t, z, 0.0), axis=-1, keepdims=True)  # (tile_n, 1)
    nll = lse - z_t                                               # (tile_n, 1) = -log p(target)

    # Mask rows that are batch padding (N rounded up to a tile multiple in the wrapper).
    row = jax.lax.broadcasted_iota(jnp.int32, nll.shape, 0) + i * tile_n
    nll = jnp.where(row < n_valid, nll, 0.0)

    acc_ref[...] += jnp.sum(nll, axis=0, keepdims=True)           # running sum, (1, 1)

    @pl.when(i == pl.num_programs(0) - 1)
    def _finalize():
        logp = acc_ref[...] * (1.0 / n_valid)                     # mean CE, (1, 1)
        p = jnp.exp(-logp)
        q = 1.0 - p
        if float(gamma) == 2.0:
            focal = q * q                                         # avoid pow -> exp(log) on the EUP
        else:
            focal = q ** jnp.float32(gamma)
        out_ref[...] = (focal * logp).astype(jnp.float32)


def focal_loss(logits, target, gamma=2.0, max_tile_n=512):
    """logits: (N, C) float (any dtype, e.g. bf16/f32), target: (N,) int -> scalar f32."""
    N, C = logits.shape
    itemsize = jnp.dtype(logits.dtype).itemsize

    # Row tile: multiple of 8 (sublane), bounded so the double-buffered logits tile
    # stays a few MiB of VMEM (portable to v7x's 64 MiB VMEM / v5e's scoped limit).
    budget_rows = max(8, (4 * 1024 * 1024) // max(1, C * itemsize))
    tile_n = min(int(max_tile_n), int(budget_rows))
    tile_n = max(8, (tile_n // 8) * 8)
    tile_n = min(tile_n, ((N + 7) // 8) * 8)

    # Pad the batch up to a multiple of tile_n; padded rows are masked in-kernel.
    n_pad = pl.cdiv(N, tile_n) * tile_n
    t2 = target.reshape(N, 1).astype(jnp.int32)
    if n_pad != N:
        logits = jnp.pad(logits, ((0, n_pad - N), (0, 0)))
        t2 = jnp.pad(t2, ((0, n_pad - N), (0, 0)))

    grid = (n_pad // tile_n,)
    kernel = functools.partial(_focal_loss_kernel, gamma=gamma, n_valid=N, tile_n=tile_n)

    out = pl.pallas_call(
        kernel,
        out_shape=jax.ShapeDtypeStruct((1, 1), jnp.float32),
        grid_spec=pltpu.PrefetchScalarGridSpec(
            num_scalar_prefetch=0,
            grid=grid,
            in_specs=[
                pl.BlockSpec((tile_n, C), lambda i: (i, 0)),   # logits tile (auto double-buffered)
                pl.BlockSpec((tile_n, 1), lambda i: (i, 0)),   # targets tile
            ],
            out_specs=pl.BlockSpec((1, 1), lambda i: (0, 0)),  # resident scalar output
            scratch_shapes=[pltpu.VMEM((1, 1), jnp.float32)],  # running NLL sum
        ),
        compiler_params=pltpu.CompilerParams(
            dimension_semantics=("arbitrary",),                # grid axis is a reduction
            vmem_limit_bytes=32 * 1024 * 1024,
        ),
        cost_estimate=pl.CostEstimate(
            flops=5 * N * C,
            transcendentals=N * C,
            bytes_accessed=N * C * itemsize + N * 4 + 4,
        ),
    )(logits, t2)   # logits passed in native dtype; upcast happens in-kernel
    return out[0, 0]


def _focal_loss_ref(logits, target, gamma=2.0):
    # Pure-JAX reference (mirrors torch: CE(mean) -> focal transform on the scalar).
    logprob = jax.nn.log_softmax(logits.astype(jnp.float32), axis=-1)
    nll = -jnp.take_along_axis(logprob, target[:, None].astype(jnp.int32), axis=-1)[:, 0]
    logp = jnp.mean(nll)
    p = jnp.exp(-logp)
    return (1.0 - p) ** gamma * logp


if __name__ == "__main__":
    key = jax.random.PRNGKey(0)

    # Small canonical case: batch of 8 logits over 32 classes (single tile).
    k1, k2, k3, k4, k5, k6 = jax.random.split(key, 6)
    N, C = 8, 32
    logits = jax.random.normal(k1, (N, C), dtype=jnp.float32)
    target = jax.random.randint(k2, (N,), 0, C, dtype=jnp.int32)
    out = jax.block_until_ready(focal_loss(logits, target, gamma=2.0))
    ref = _focal_loss_ref(logits, target, gamma=2.0)
    assert jnp.allclose(out, ref, atol=1e-5, rtol=1e-5), (out, ref)

    # Multi-tile grid path (accumulator across grid steps).
    N2, C2 = 48, 32
    logits2 = jax.random.normal(k3, (N2, C2), dtype=jnp.float32)
    target2 = jax.random.randint(k4, (N2,), 0, C2, dtype=jnp.int32)
    out2 = jax.block_until_ready(focal_loss(logits2, target2, gamma=2.0, max_tile_n=16))
    ref2 = _focal_loss_ref(logits2, target2, gamma=2.0)
    assert jnp.allclose(out2, ref2, atol=1e-5, rtol=1e-5), (out2, ref2)

    # Ragged batch (padding rows masked in-kernel).
    N3, C3 = 21, 32
    logits3 = jax.random.normal(k5, (N3, C3), dtype=jnp.float32)
    target3 = jax.random.randint(k6, (N3,), 0, C3, dtype=jnp.int32)
    out3 = jax.block_until_ready(focal_loss(logits3, target3, gamma=2.0, max_tile_n=16))
    ref3 = _focal_loss_ref(logits3, target3, gamma=2.0)
    assert jnp.allclose(out3, ref3, atol=1e-5, rtol=1e-5), (out3, ref3)

    print("KERNEL_OK")
</pallas_src>

<mosaic_0001>
module attributes {stable_mosaic.version = 11 : i64} {
  func.func @_focal_loss_kernel(%arg0: i32, %arg1: memref<8x32xf32, #tpu.memory_space<vmem>>, %arg2: memref<8x1xi32, #tpu.memory_space<vmem>>, %arg3: memref<1x1xf32, #tpu.memory_space<vmem>>, %arg4: memref<1x1xf32, #tpu.memory_space<vmem>>) attributes {dimension_semantics = [#tpu.dimension_semantics<arbitrary>], iteration_bounds = array<i64: 1>, scalar_prefetch = 0 : i64, scratch_operands = 1 : i64, tpu.core_type = #tpu.core_type<tc>, window_params = [{transform_indices = @transform_0, window_bounds = array<i64: 8, 32>}, {transform_indices = @transform_1, window_bounds = array<i64: 8, 1>}, {pipeline_mode = #tpu.pipeline_mode<synchronous>, transform_indices = @transform_2, window_bounds = array<i64: 1, 1>}]} {
    %c0_i32 = arith.constant 0 : i32
    %0 = arith.cmpi eq, %arg0, %c0_i32 : i32
    %1 = arith.extui %0 : i1 to i32
    %c0_i32_0 = arith.constant 0 : i32
    %2 = arith.cmpi ne, %1, %c0_i32_0 : i32
    scf.if %2 {
      %cst_16 = arith.constant 0.000000e+00 : f32
      %37 = vector.broadcast %cst_16 : f32 to vector<1x1xf32>
      %c0_17 = arith.constant 0 : index
      %c0_18 = arith.constant 0 : index
      %38 = vector.load %arg4[%c0_17, %c0_18] : memref<1x1xf32, #tpu.memory_space<vmem>>, vector<1x1xf32>
      tpu.vector_store %arg4[%c0_17, %c0_18], %37 {strides = array<i32>} : memref<1x1xf32, #tpu.memory_space<vmem>>, vector<1x1xf32>,
    } else {
    }
    %c0 = arith.constant 0 : index
    %c0_1 = arith.constant 0 : index
    %3 = vector.load %arg1[%c0, %c0_1] : memref<8x32xf32, #tpu.memory_space<vmem>>, vector<8x32xf32>
    %c0_2 = arith.constant 0 : index
    %c0_3 = arith.constant 0 : index
    %4 = vector.load %arg2[%c0_2, %c0_3] : memref<8x1xi32, #tpu.memory_space<vmem>>, vector<8x1xi32>
    %cst = arith.constant dense<0xFF800000> : vector<8xf32>
    %5 = vector.multi_reduction <maximumf>, %3, %cst [1] : vector<8x32xf32> to vector<8xf32>
    %6 = vector.shape_cast %5 : vector<8xf32> to vector<8x1xf32>
    %7 = vector.broadcast %6 : vector<8x1xf32> to vector<8x32xf32>
    %8 = arith.subf %3, %7 : vector<8x32xf32>
    %9 = math.exp %8 : vector<8x32xf32>
    %cst_4 = arith.constant dense<0.000000e+00> : vector<8xf32>
    %10 = vector.multi_reduction <add>, %9, %cst_4 [1] : vector<8x32xf32> to vector<8xf32>
    %11 = vector.shape_cast %10 : vector<8xf32> to vector<8x1xf32>
    %12 = math.log %11 : vector<8x1xf32>
    %13 = tpu.iota {dimensions = array<i32: 1>} : vector<8x32xi32>
    %14 = vector.broadcast %4 : vector<8x1xi32> to vector<8x32xi32>
    %15 = arith.cmpi eq, %13, %14 : vector<8x32xi32>
    %cst_5 = arith.constant 0.000000e+00 : f32
    %16 = vector.broadcast %cst_5 : f32 to vector<8x32xf32>
    %17 = arith.select %15, %8, %16 : vector<8x32xi1>, vector<8x32xf32>
    %cst_6 = arith.constant dense<0.000000e+00> : vector<8xf32>
    %18 = vector.multi_reduction <add>, %17, %cst_6 [1] : vector<8x32xf32> to vector<8xf32>
    %19 = vector.shape_cast %18 : vector<8xf32> to vector<8x1xf32>
    %20 = arith.subf %12, %19 : vector<8x1xf32>
    %21 = tpu.iota {dimensions = array<i32: 0>} : vector<8x1xi32>
    %c8_i32 = arith.constant 8 : i32
    %22 = arith.muli %arg0, %c8_i32 : i32
    %23 = vector.broadcast %22 : i32 to vector<8x1xi32>
    %24 = arith.addi %21, %23 : vector<8x1xi32>
    %c8_i32_7 = arith.constant 8 : i32
    %25 = vector.broadcast %c8_i32_7 : i32 to vector<8x1xi32>
    %26 = arith.cmpi slt, %24, %25 : vector<8x1xi32>
    %cst_8 = arith.constant 0.000000e+00 : f32
    %27 = vector.broadcast %cst_8 : f32 to vector<8x1xf32>
    %28 = arith.select %26, %20, %27 : vector<8x1xi1>, vector<8x1xf32>
    %c0_9 = arith.constant 0 : index
    %c0_10 = arith.constant 0 : index
    %29 = vector.load %arg4[%c0_9, %c0_10] : memref<1x1xf32, #tpu.memory_space<vmem>>, vector<1x1xf32>
    %cst_11 = arith.constant dense<0.000000e+00> : vector<1xf32>
    %30 = vector.multi_reduction <add>, %28, %cst_11 [0] : vector<8x1xf32> to vector<1xf32>
    %31 = vector.shape_cast %30 : vector<1xf32> to vector<1x1xf32>
    %32 = arith.addf %29, %31 : vector<1x1xf32>
    %c0_12 = arith.constant 0 : index
    %c0_13 = arith.constant 0 : index
    %33 = vector.load %arg4[%c0_12, %c0_13] : memref<1x1xf32, #tpu.memory_space<vmem>>, vector<1x1xf32>
    tpu.vector_store %arg4[%c0_12, %c0_13], %32 {strides = array<i32>} : memref<1x1xf32, #tpu.memory_space<vmem>>, vector<1x1xf32>,
    %c0_i32_14 = arith.constant 0 : i32
    %34 = arith.cmpi eq, %arg0, %c0_i32_14 : i32
    %35 = arith.extui %34 : i1 to i32
    %c0_i32_15 = arith.constant 0 : i32
    %36 = arith.cmpi ne, %35, %c0_i32_15 : i32
    scf.if %36 {
      %c0_16 = arith.constant 0 : index
      %c0_17 = arith.constant 0 : index
      %37 = vector.load %arg4[%c0_16, %c0_17] : memref<1x1xf32, #tpu.memory_space<vmem>>, vector<1x1xf32>
      %cst_18 = arith.constant 1.250000e-01 : f32
      %38 = vector.broadcast %cst_18 : f32 to vector<1x1xf32>
      %39 = arith.mulf %37, %38 : vector<1x1xf32>
      %cst_19 = arith.constant 0.000000e+00 : f32
      %40 = vector.broadcast %cst_19 : f32 to vector<1x1xf32>
      %41 = arith.subf %40, %39 : vector<1x1xf32>
      %42 = math.exp %41 : vector<1x1xf32>
      %cst_20 = arith.constant 1.000000e+00 : f32
      %43 = vector.broadcast %cst_20 : f32 to vector<1x1xf32>
      %44 = arith.subf %43, %42 : vector<1x1xf32>
      %45 = arith.mulf %44, %44 : vector<1x1xf32>
      %46 = arith.mulf %45, %39 : vector<1x1xf32>
      %c0_21 = arith.constant 0 : index
      %c0_22 = arith.constant 0 : index
      %47 = vector.load %arg3[%c0_21, %c0_22] : memref<1x1xf32, #tpu.memory_space<vmem>>, vector<1x1xf32>
      tpu.vector_store %arg3[%c0_21, %c0_22], %46 {strides = array<i32>} : memref<1x1xf32, #tpu.memory_space<vmem>>, vector<1x1xf32>,
    } else {
    }
    return
  }
  func.func @transform_0(%arg0: i32) -> (i32, i32) {
    %c0_i32 = arith.constant 0 : i32
    %c0_i32_0 = arith.constant 0 : i32
    return %arg0, %c0_i32 : i32, i32
  }
  func.func @transform_1(%arg0: i32) -> (i32, i32) {
    %c0_i32 = arith.constant 0 : i32
    %c0_i32_0 = arith.constant 0 : i32
    return %arg0, %c0_i32 : i32, i32
  }
  func.func @transform_2(%arg0: i32) -> (i32, i32) {
    %c0_i32 = arith.constant 0 : i32
    %c0_i32_0 = arith.constant 0 : i32
    %c0_i32_1 = arith.constant 0 : i32
    return %c0_i32, %c0_i32_0 : i32, i32
  }
}

</mosaic_0001>

<bundles_post_ra>
// kernel: tpu_custom_call.1
= control target key start
LH: loop header
LB: loop body
LE: loop exit
PB: predicated region body
PF: predicated region fallthrough
CT: control target
= control target key end

     0   :  { %vm20_vm0 = vcmask 261120   ;;  %s151_s0 = inlined_call_operand.vmem [shape: f32[8,32], index: 0, kind: input, shape index: {}]   ;;  %s152_s1 = inlined_call_operand.vmem [shape: s32[8,1], index: 1, kind: input, shape index: {}]   ;;  %s153_s2 = inlined_call_operand.hbm [shape: f32[1,1], index: 2, kind: output, shape index: {}]  }
   0x1   :  { %v18_v0 = vld [vmem:[%s151_s0] sm:$0xff] }
   0x2   :  { %7 = vsyncpa [#allocation4], 0  ;;  %v21_v1 = vsel %vm20_vm0, %v18_v0, -inf  ;;  %v118_v2 = vmov 0   ;;  %v19_v3 = vld [vmem:[%s152_s1] sm:$0xff]  ;;  %v32_v7 = vlaneseq  ;;  %vm16_vm2 = vcmask 0  }
   0x3   :  { %89 = vset.pattern.permute.xlu0 %v118_v2  ;;  %v119_v14 = vmov 0.0   ;;  %s120_s0 = smov [#allocation3]  }
   0x4   :  { %22 = vmax.xlane.f32.xlu0 %v21_v1  ;;  %v33_v8 = vand.u32 127, %v32_v7  ;;  %17 = vst.msk [vmem:[#allocation2] sm:$0x1] %vm16_vm2, %v119_v14  ;;  %s78_s1 = sshll.u32 %s120_s0, 4  ;;  %s79_s1 = int_to_ptr.vmem [resolvable:$true] %s78_s1 }
   0x5   :  { %s96_s13 = scalar_lea.vmem %s79_s1, 16  ;;  %s100_s14 = scalar_lea.vmem %s79_s1, 32 }
   0x6   :  { %p97_p0 = scmp.ne.s32.totalorder %s79_s1, %s96_s13  ;;  %p101_p1 = scmp.lt.s32.totalorder %s79_s1, %s79_s1 }
   0x7   :  { %p102_p2 = scmp.lt.s32.totalorder %s100_s14, %s96_s13 }
   0x9   :  { %p103_p3 = por %p102_p2, %p101_p1 }
   0xb   :  { %v50_v25 = vld [vmem:[#allocation2] sm:$0x1]  ;;  %p104_p4 = pnand %p103_p3, %p97_p0 }
  0x1a   :  { %35 = vperm.xlu0 %89, %v19_v3  }
  0x8d   :  { %v23_v4 = vpop.xlane.xlu0 %22 }
  0x8e   :  { %v24_v5 = vsub.f32 %v18_v0, %v23_v4 }
  0x90   :  { %v25_v6 = vmul.f32 1.442695, %v24_v5 }
  0x92   :  { %90 = vpow2.f32 %v25_v6 }
  0x95   :  { %v36_v9 = vpop.permute.xlu0 %35 }
  0x96   :  { %vm37_vm1 = vcmp.eq.s32.totalorder %v33_v8, %v36_v9 }
  0x97   :  { %v38_v12 = vsel %vm37_vm1, %v24_v5, 0.0 }
  0x98   :  { %v39_v13 = vsel %vm20_vm0, %v38_v12, 0.0 }
  0x9f   :  { %v91_v10 = vpop.eup %90 }
  0xa0   :  { %v27_v11 = vsel %vm20_vm0, %v91_v10, 0.0 }
  0xa1   :  { %28 = vadd.xlane.f32.xlu1 %v27_v11 }
  0xa5   :  { %40 = vadd.xlane.f32.xlu1 %v39_v13 }
 0x12a   :  { %v29_v15 = vpop.xlane.xlu1 %28 }
 0x12b   :  { %92 = vlog2.f32 %v29_v15 }
 0x12e   :  { %v41_v18 = vpop.xlane.xlu1 %40 }
 0x138   :  { %v93_v16 = vpop.eup %92 }
 0x139   :  { %v31_v17 = vmul.f32 0.6931472, %v93_v16 }
 0x13b   :  { %v42_v19 = vsub.f32 %v31_v17, %v41_v18 }
 0x13d   :  { %v51_v20 = vrot.slane %v42_v19, 4 }
 0x13f   :  { %v52_v21 = vadd.f32 %v51_v20, %v42_v19 }
 0x141   :  { %v53_v22 = vrot.slane %v52_v21, 2 }
 0x143   :  { %v54_v23 = vadd.f32 %v53_v22, %v52_v21 }
 0x145   :  { %v55_v24 = vrot.slane %v54_v23, 1 }
 0x147   :  { %v56_v26 = vadd.f32 %v55_v24, %v54_v23 }
 0x149   :  { %v57_v27 = vadd.f32 %v56_v26, %v50_v25 }
 0x14b   :  { %59 = vst.msk [vmem:[#allocation2] sm:$0x1] %vm16_vm2, %v57_v27 }
 0x152   :  { %v63_v28 = vld [vmem:[#allocation2] sm:$0x1] }
 0x153   :  { %v64_v29 = vmul.f32 0.125, %v63_v28 }
 0x155   :  { %v65_v30 = vsub.f32 0.0, %v64_v29 }
 0x157   :  { %v66_v31 = vmul.f32 1.442695, %v65_v30 }
 0x159   :  { %94 = vpow2.f32 %v66_v31 }
 0x166   :  { %v95_v32 = vpop.eup %94 }
 0x167   :  { %v68_v33 = vsub.f32 1.0, %v95_v32 }
 0x169   :  { %v69_v34 = vmul.f32 %v68_v33, %v68_v33 }
 0x16b   :  { %v70_v35 = vmul.f32 %v69_v34, %v64_v29 }
 0x16d   :  { %71 = vst.msk [vmem:[#allocation3] sm:$0x1] %vm16_vm2, %v70_v35 }
 0x16e   :  { %107 = shalt.err (!%p104_p4)
}
 0x16f   :  { %81 = dma.vmem_to_hbm [thread:$0]  %s79_s1, 16, %s153_s2, [#allocation4]  }
 0x170   :  { %116 = dma.done.wait [#allocation4], 16  }
 0x171   :  { %117 = vsyncadd [#allocation4], 4294967280 }
 0x172   :  { %85 = vsyncpa [#allocation4], 1 }

</bundles_post_ra>
